<compile_context>
chip_gen: v6e
topology: v6e:2x2x1
jax: 0.10.0
libtpu: 0.0.40
codegen_flags: <defaults>
</compile_context>

<pallas_src>
import functools

import numpy as np
import jax
import jax.numpy as jnp
from jax import lax
from jax.experimental import pallas as pl
from jax.experimental.pallas import tpu as pltpu


# ----------------------------------------------------------------------------
# Kernel
# ----------------------------------------------------------------------------
def _res_down_kernel(x_ref, m1_ref, b1_ref, m2_ref, b2_ref, m3_ref, b3_ref,
                     o_ref, ypad_ref, *, H, WCg):
    """Fused double_conv(+BN+ReLU) -> residual add -> maxpool 2x2 -> 1x1 conv.

    x_ref   : (1, H+2, WCg)     one image group, H zero-padded, even/odd-W lane layout
    m1_ref  : (3, WCg, WCg)     conv1 banded matrices (one per kh, BN1 folded, block-diag over images)
    b1_ref  : (1, WCg)
    m2_ref  : (3, WCg, WCg)     conv2 banded matrices (BN2 folded)
    b2_ref  : (1, WCg)
    m3_ref  : (WCg//2, ...)     block-diagonal 1x1-conv matrix
    b3_ref  : (1, Q*Cout)
    o_ref   : (1, Ho, Q*Cout)   lane-dense output block (128 lanes for the demo)
    ypad_ref: VMEM scratch (H+2, WCg) holding the H-padded conv1 output
    """
    Ho = H // 2
    half = WCg // 2          # even-w columns live in lanes [0, half)

    x = x_ref[0]             # (H+2, WCg) fp32

    # ---- conv1 + BN1 + ReLU : 3 accumulated MXU matmuls (K = WCg) ----
    acc = jnp.dot(x[0:H], m1_ref[0], preferred_element_type=jnp.float32)
    acc = acc + jnp.dot(x[1:1 + H], m1_ref[1], preferred_element_type=jnp.float32)
    acc = acc + jnp.dot(x[2:2 + H], m1_ref[2], preferred_element_type=jnp.float32)
    y1 = jnp.maximum(acc + b1_ref[...], 0.0)                  # (H, WCg)

    # ---- H-pad conv1 output into VMEM scratch for conv2 ----
    ypad_ref[...] = jnp.zeros_like(ypad_ref)
    ypad_ref[1:1 + H, :] = y1
    yp = ypad_ref[...]                                        # (H+2, WCg)

    # ---- conv2 + BN2 + ReLU ----
    acc = jnp.dot(yp[0:H], m2_ref[0], preferred_element_type=jnp.float32)
    acc = acc + jnp.dot(yp[1:1 + H], m2_ref[1], preferred_element_type=jnp.float32)
    acc = acc + jnp.dot(yp[2:2 + H], m2_ref[2], preferred_element_type=jnp.float32)
    y2 = jnp.maximum(acc + b2_ref[...], 0.0)                  # (H, WCg)

    # ---- residual add (rows 1..H of x are the original image) ----
    s = y2 + x[1:1 + H, :]                                    # (H, WCg)

    # ---- maxpool 2x2, stride 2 ----
    # W direction: even columns sit in lanes [0, half), odd columns in [half, WCg).
    mw = jnp.maximum(s[:, :half], s[:, half:])                # (H, half)
    # H direction: static row-pair maxima (tile-safe; no strided slicing needed).
    mp = jnp.concatenate(
        [jnp.maximum(mw[2 * i:2 * i + 1, :], mw[2 * i + 1:2 * i + 2, :])
         for i in range(Ho)],
        axis=0)                                               # (Ho, half)

    # ---- 1x1 conv as a block-diagonal matmul; lane-dense store ----
    out = jnp.dot(mp, m3_ref[...], preferred_element_type=jnp.float32)
    out = out + b3_ref[...]
    o_ref[0] = out.astype(o_ref.dtype)                        # (Ho, Q*Cout)


# ----------------------------------------------------------------------------
# Wrapper / glue
# ----------------------------------------------------------------------------
def _fold_bn(w, b, gamma, beta, mean, var, eps):
    """Fold eval-mode BatchNorm into conv weight (OIHW) and bias."""
    scale = gamma / jnp.sqrt(var + eps)
    return w * scale[:, None, None, None], (b - mean) * scale + beta


def _banded_conv_mats(w_eff, g_of_p, w_of_p):
    """(Co, Ci, 3, 3) conv weights -> (3, P*Ci, P*Co) banded matrices so a 'same'
    3x3 conv over the permuted (H, P*Ci) layout is  sum_kh rows[kh] @ M[kh].
    Positions p carry (image g_of_p, column w_of_p); columns never mix images."""
    Co, Ci = w_eff.shape[0], w_eff.shape[1]
    P = len(w_of_p)
    same_img = (g_of_p[:, None] == g_of_p[None, :])
    mats = []
    for kh in range(3):
        m = jnp.zeros((P * Ci, P * Co), jnp.float32)
        for kw in range(3):
            keep = (same_img
                    & (w_of_p[:, None] == w_of_p[None, :] + kw - 1)).astype(np.float32)
            m = m + jnp.kron(jnp.asarray(keep), w_eff[:, :, kh, kw].T)
        mats.append(m)
    return jnp.stack(mats, axis=0)


def res_down_forward(x, params, *, eps=1e-5):
    """x: (N, Cin, H, W) NCHW fp32 -> (N, Cout, H//2, W//2)."""
    N, Cin, H, W = x.shape
    Cout = params["w3"].shape[0]
    assert H % 2 == 0 and W % 2 == 0, "maxpool 2x2 needs even spatial dims"
    Ho, Wo = H // 2, W // 2

    # Fold G batch images onto the lane axis so the lane width is a multiple of
    # 128 (fully dense vregs, unmasked stores, full MXU width).  G=1 fallback.
    G = 1
    for g in range(1, N + 1):
        if N % g == 0 and (g * W * Cin) % 128 == 0:
            G = g
            break
    ngrp = N // G
    P = G * W                # lane "positions" per group (each carries Cin channels)
    WCg = P * Cin            # lane width of the activation layout
    Q = G * Wo               # output lane positions (each carries Cout channels)

    # Lane order: all even-w columns first (ordered by image, then w), then all
    # odd-w columns -> the W half of the maxpool is a static half/half lane slice.
    pos = ([(g, w) for g in range(G) for w in range(0, W, 2)]
           + [(g, w) for g in range(G) for w in range(1, W, 2)])
    g_of_p = np.array([g for g, w in pos], dtype=np.int64)
    w_of_p = np.array([w for g, w in pos], dtype=np.int64)
    perm = g_of_p * W + w_of_p                                  # lane pos -> (g, w)

    # Fold eval-mode BatchNorm into the two 3x3 convs.
    w1, b1 = _fold_bn(params["w1"], params["b1"], params["g1"], params["be1"],
                      params["rm1"], params["rv1"], eps)
    w2, b2 = _fold_bn(params["w2"], params["b2"], params["g2"], params["be2"],
                      params["rm2"], params["rv2"], eps)

    m1 = _banded_conv_mats(w1, g_of_p, w_of_p)                  # (3, WCg, WCg)
    m2 = _banded_conv_mats(w2, g_of_p, w_of_p)                  # (3, WCg, WCg)
    b1f = jnp.tile(b1, P).reshape(1, WCg)
    b2f = jnp.tile(b2, P).reshape(1, WCg)

    w3 = params["w3"][:, :, 0, 0]                               # (Cout, Cin)
    m3 = jnp.kron(jnp.eye(Q, dtype=jnp.float32), w3.T)          # (Q*Cin, Q*Cout)
    b3f = jnp.tile(params["b3"], Q).reshape(1, Q * Cout)

    # NCHW -> (ngrp, H+2, WCg): group images, permute column order, flatten
    # (pos, Cin) onto lanes, zero-pad one row top/bottom for the 3x3 convs.
    xt = jnp.transpose(x, (0, 2, 3, 1)).reshape(ngrp, G, H, W, Cin)
    xt = jnp.transpose(xt, (0, 2, 1, 3, 4)).reshape(ngrp, H, P, Cin)
    xt = xt[:, :, perm, :].reshape(ngrp, H, WCg)
    xf = jnp.pad(xt, ((0, 0), (1, 1), (0, 0)))                  # (ngrp, H+2, WCg)

    kernel = functools.partial(_res_down_kernel, H=H, WCg=WCg)

    flops = ngrp * (2 * 2 * 3 * H * WCg * WCg                   # two 3x3 convs
                    + 2 * Ho * (Q * Cin) * (Q * Cout))          # 1x1 conv
    bytes_accessed = 4 * (xf.size + m1.size + m2.size + m3.size
                          + b1f.size + b2f.size + b3f.size + ngrp * Ho * Q * Cout)

    out = pl.pallas_call(
        kernel,
        out_shape=jax.ShapeDtypeStruct((ngrp, Ho, Q * Cout), x.dtype),
        grid_spec=pltpu.PrefetchScalarGridSpec(
            num_scalar_prefetch=0,
            grid=(ngrp,),
            in_specs=[
                pl.BlockSpec((1, H + 2, WCg), lambda n: (n, 0, 0)),
                pl.BlockSpec((3, WCg, WCg), lambda n: (0, 0, 0)),
                pl.BlockSpec((1, WCg), lambda n: (0, 0)),
                pl.BlockSpec((3, WCg, WCg), lambda n: (0, 0, 0)),
                pl.BlockSpec((1, WCg), lambda n: (0, 0)),
                pl.BlockSpec((Q * Cin, Q * Cout), lambda n: (0, 0)),
                pl.BlockSpec((1, Q * Cout), lambda n: (0, 0)),
            ],
            out_specs=pl.BlockSpec((1, Ho, Q * Cout), lambda n: (n, 0, 0)),
            scratch_shapes=[pltpu.VMEM((H + 2, WCg), jnp.float32)],
        ),
        compiler_params=pltpu.CompilerParams(
            dimension_semantics=("parallel",)),
        cost_estimate=pl.CostEstimate(flops=flops, transcendentals=0,
                                      bytes_accessed=bytes_accessed),
    )(xf, m1, b1f, m2, b2f, m3, b3f)

    # (ngrp, Ho, Q*Cout) -> NCHW
    out = out.reshape(ngrp, Ho, G, Wo, Cout)
    out = jnp.transpose(out, (0, 2, 4, 1, 3)).reshape(N, Cout, Ho, Wo)
    return out


# ----------------------------------------------------------------------------
# Pure-JAX reference (eval-mode BN), for the self-check
# ----------------------------------------------------------------------------
def _reference(x, p, eps=1e-5):
    def bn(y, g, b, m, v):
        s = (g / jnp.sqrt(v + eps))
        return (y - m[None, :, None, None]) * s[None, :, None, None] \
            + b[None, :, None, None]

    def conv(y, w, b, pad):
        out = lax.conv_general_dilated(
            y, w, window_strides=(1, 1), padding=((pad, pad), (pad, pad)),
            dimension_numbers=("NCHW", "OIHW", "NCHW"),
            precision=lax.Precision.HIGHEST)
        return out + b[None, :, None, None]

    res = x
    y = jax.nn.relu(bn(conv(x, p["w1"], p["b1"], 1),
                       p["g1"], p["be1"], p["rm1"], p["rv1"]))
    y = jax.nn.relu(bn(conv(y, p["w2"], p["b2"], 1),
                       p["g2"], p["be2"], p["rm2"], p["rv2"]))
    y = y + res
    N, C, H, W = y.shape
    y = y.reshape(N, C, H // 2, 2, W // 2, 2).max(axis=(3, 5))
    return conv(y, p["w3"], p["b3"], 0)


if __name__ == "__main__":
    # res_down(in_ch=4, out_ch=8) at N=2, H=W=16.
    N, Cin, H, W, Cout = 2, 4, 16, 16, 8

    key = jax.random.PRNGKey(0)
    ks = jax.random.split(key, 15)
    x = jax.random.normal(ks[0], (N, Cin, H, W), jnp.float32)
    params = {
        "w1": 0.1 * jax.random.normal(ks[1], (Cin, Cin, 3, 3), jnp.float32),
        "b1": 0.1 * jax.random.normal(ks[2], (Cin,), jnp.float32),
        "g1": 1.0 + 0.1 * jax.random.normal(ks[3], (Cin,), jnp.float32),
        "be1": 0.1 * jax.random.normal(ks[4], (Cin,), jnp.float32),
        "rm1": 0.1 * jax.random.normal(ks[5], (Cin,), jnp.float32),
        "rv1": 1.0 + 0.1 * jax.random.uniform(ks[6], (Cin,), jnp.float32),
        "w2": 0.1 * jax.random.normal(ks[7], (Cin, Cin, 3, 3), jnp.float32),
        "b2": 0.1 * jax.random.normal(ks[8], (Cin,), jnp.float32),
        "g2": 1.0 + 0.1 * jax.random.normal(ks[9], (Cin,), jnp.float32),
        "be2": 0.1 * jax.random.normal(ks[10], (Cin,), jnp.float32),
        "rm2": 0.1 * jax.random.normal(ks[11], (Cin,), jnp.float32),
        "rv2": 1.0 + 0.1 * jax.random.uniform(ks[12], (Cin,), jnp.float32),
        "w3": 0.1 * jax.random.normal(ks[13], (Cout, Cin, 1, 1), jnp.float32),
        "b3": 0.1 * jax.random.normal(ks[14], (Cout,), jnp.float32),
    }

    out = res_down_forward(x, params)
    out = jax.block_until_ready(out)

    ref = _reference(x, params)
    assert out.shape == (N, Cout, H // 2, W // 2), out.shape
    max_err = float(jnp.max(jnp.abs(out - ref)))
    assert jnp.allclose(out, ref, atol=1e-4, rtol=1e-3), max_err

    print("KERNEL_OK")
</pallas_src>

<mosaic_0001>
module attributes {stable_mosaic.version = 11 : i64} {
  func.func @_res_down_kernel(%arg0: i32, %arg1: memref<1x18x128xf32, #tpu.memory_space<vmem>>, %arg2: memref<3x128x128xf32, #tpu.memory_space<vmem>>, %arg3: memref<1x128xf32, #tpu.memory_space<vmem>>, %arg4: memref<3x128x128xf32, #tpu.memory_space<vmem>>, %arg5: memref<1x128xf32, #tpu.memory_space<vmem>>, %arg6: memref<64x128xf32, #tpu.memory_space<vmem>>, %arg7: memref<1x128xf32, #tpu.memory_space<vmem>>, %arg8: memref<1x8x128xf32, #tpu.memory_space<vmem>>, %arg9: memref<18x128xf32, #tpu.memory_space<vmem>>) attributes {dimension_semantics = [#tpu.dimension_semantics<parallel>], iteration_bounds = array<i64: 1>, scalar_prefetch = 0 : i64, scratch_operands = 1 : i64, tpu.core_type = #tpu.core_type<tc>, window_params = [{transform_indices = @transform_0, window_bounds = array<i64: 1, 18, 128>}, {pipeline_mode = #tpu.pipeline_mode<synchronous>, transform_indices = @transform_1, window_bounds = array<i64: 3, 128, 128>}, {pipeline_mode = #tpu.pipeline_mode<synchronous>, transform_indices = @transform_2, window_bounds = array<i64: 1, 128>}, {pipeline_mode = #tpu.pipeline_mode<synchronous>, transform_indices = @transform_3, window_bounds = array<i64: 3, 128, 128>}, {pipeline_mode = #tpu.pipeline_mode<synchronous>, transform_indices = @transform_4, window_bounds = array<i64: 1, 128>}, {pipeline_mode = #tpu.pipeline_mode<synchronous>, transform_indices = @transform_5, window_bounds = array<i64: 64, 128>}, {pipeline_mode = #tpu.pipeline_mode<synchronous>, transform_indices = @transform_6, window_bounds = array<i64: 1, 128>}, {transform_indices = @transform_7, window_bounds = array<i64: 1, 8, 128>}]} {
    %c0 = arith.constant 0 : index
    %c0_0 = arith.constant 0 : index
    %c0_1 = arith.constant 0 : index
    %0 = vector.load %arg1[%c0, %c0_0, %c0_1] : memref<1x18x128xf32, #tpu.memory_space<vmem>>, vector<1x18x128xf32>
    %1 = vector.shape_cast %0 : vector<1x18x128xf32> to vector<18x128xf32>
    %2 = vector.extract_strided_slice %1 {offsets = [0, 0], sizes = [16, 128], strides = [1, 1]} : vector<18x128xf32> to vector<16x128xf32>
    %c0_2 = arith.constant 0 : index
    %c0_3 = arith.constant 0 : index
    %c0_4 = arith.constant 0 : index
    %3 = vector.load %arg2[%c0_2, %c0_3, %c0_4] : memref<3x128x128xf32, #tpu.memory_space<vmem>>, vector<1x128x128xf32>
    %4 = vector.shape_cast %3 : vector<1x128x128xf32> to vector<128x128xf32>
    %cst = arith.constant dense<0.000000e+00> : vector<16x128xf32>
    %5 = tpu.matmul %2, %4, %cst {dimension_numbers = #tpu.dot_dimension_numbers<[1], [0], [0], [1], [0, 0, 1, 1], [], []>} : vector<16x128xf32>, vector<128x128xf32>, vector<16x128xf32> -> vector<16x128xf32>
    %6 = vector.extract_strided_slice %1 {offsets = [1, 0], sizes = [16, 128], strides = [1, 1]} : vector<18x128xf32> to vector<16x128xf32>
    %c1 = arith.constant 1 : index
    %c0_5 = arith.constant 0 : index
    %c0_6 = arith.constant 0 : index
    %7 = vector.load %arg2[%c1, %c0_5, %c0_6] : memref<3x128x128xf32, #tpu.memory_space<vmem>>, vector<1x128x128xf32>
    %8 = vector.shape_cast %7 : vector<1x128x128xf32> to vector<128x128xf32>
    %cst_7 = arith.constant dense<0.000000e+00> : vector<16x128xf32>
    %9 = tpu.matmul %6, %8, %cst_7 {dimension_numbers = #tpu.dot_dimension_numbers<[1], [0], [0], [1], [0, 0, 1, 1], [], []>} : vector<16x128xf32>, vector<128x128xf32>, vector<16x128xf32> -> vector<16x128xf32>
    %10 = arith.addf %5, %9 : vector<16x128xf32>
    %11 = vector.extract_strided_slice %1 {offsets = [2, 0], sizes = [16, 128], strides = [1, 1]} : vector<18x128xf32> to vector<16x128xf32>
    %c2 = arith.constant 2 : index
    %c0_8 = arith.constant 0 : index
    %c0_9 = arith.constant 0 : index
    %12 = vector.load %arg2[%c2, %c0_8, %c0_9] : memref<3x128x128xf32, #tpu.memory_space<vmem>>, vector<1x128x128xf32>
    %13 = vector.shape_cast %12 : vector<1x128x128xf32> to vector<128x128xf32>
    %cst_10 = arith.constant dense<0.000000e+00> : vector<16x128xf32>
    %14 = tpu.matmul %11, %13, %cst_10 {dimension_numbers = #tpu.dot_dimension_numbers<[1], [0], [0], [1], [0, 0, 1, 1], [], []>} : vector<16x128xf32>, vector<128x128xf32>, vector<16x128xf32> -> vector<16x128xf32>
    %15 = arith.addf %10, %14 : vector<16x128xf32>
    %c0_11 = arith.constant 0 : index
    %c0_12 = arith.constant 0 : index
    %16 = vector.load %arg3[%c0_11, %c0_12] : memref<1x128xf32, #tpu.memory_space<vmem>>, vector<1x128xf32>
    %17 = vector.broadcast %16 : vector<1x128xf32> to vector<16x128xf32>
    %18 = arith.addf %15, %17 : vector<16x128xf32>
    %cst_13 = arith.constant 0.000000e+00 : f32
    %19 = vector.broadcast %cst_13 : f32 to vector<16x128xf32>
    %20 = arith.maximumf %18, %19 : vector<16x128xf32>
    %cst_14 = arith.constant 0.000000e+00 : f32
    %21 = vector.broadcast %cst_14 : f32 to vector<18x128xf32>
    %c0_15 = arith.constant 0 : index
    %c0_16 = arith.constant 0 : index
    %22 = vector.load %arg9[%c0_15, %c0_16] : memref<18x128xf32, #tpu.memory_space<vmem>>, vector<18x128xf32>
    tpu.vector_store %arg9[%c0_15, %c0_16], %21 {strides = array<i32>} : memref<18x128xf32, #tpu.memory_space<vmem>>, vector<18x128xf32>,
    %c1_17 = arith.constant 1 : index
    %c0_18 = arith.constant 0 : index
    %23 = vector.load %arg9[%c1_17, %c0_18] : memref<18x128xf32, #tpu.memory_space<vmem>>, vector<16x128xf32>
    tpu.vector_store %arg9[%c1_17, %c0_18], %20 {strides = array<i32>} : memref<18x128xf32, #tpu.memory_space<vmem>>, vector<16x128xf32>,
    %c0_19 = arith.constant 0 : index
    %c0_20 = arith.constant 0 : index
    %24 = vector.load %arg9[%c0_19, %c0_20] : memref<18x128xf32, #tpu.memory_space<vmem>>, vector<18x128xf32>
    %25 = vector.extract_strided_slice %24 {offsets = [0, 0], sizes = [16, 128], strides = [1, 1]} : vector<18x128xf32> to vector<16x128xf32>
    %c0_21 = arith.constant 0 : index
    %c0_22 = arith.constant 0 : index
    %c0_23 = arith.constant 0 : index
    %26 = vector.load %arg4[%c0_21, %c0_22, %c0_23] : memref<3x128x128xf32, #tpu.memory_space<vmem>>, vector<1x128x128xf32>
    %27 = vector.shape_cast %26 : vector<1x128x128xf32> to vector<128x128xf32>
    %cst_24 = arith.constant dense<0.000000e+00> : vector<16x128xf32>
    %28 = tpu.matmul %25, %27, %cst_24 {dimension_numbers = #tpu.dot_dimension_numbers<[1], [0], [0], [1], [0, 0, 1, 1], [], []>} : vector<16x128xf32>, vector<128x128xf32>, vector<16x128xf32> -> vector<16x128xf32>
    %29 = vector.extract_strided_slice %24 {offsets = [1, 0], sizes = [16, 128], strides = [1, 1]} : vector<18x128xf32> to vector<16x128xf32>
    %c1_25 = arith.constant 1 : index
    %c0_26 = arith.constant 0 : index
    %c0_27 = arith.constant 0 : index
    %30 = vector.load %arg4[%c1_25, %c0_26, %c0_27] : memref<3x128x128xf32, #tpu.memory_space<vmem>>, vector<1x128x128xf32>
    %31 = vector.shape_cast %30 : vector<1x128x128xf32> to vector<128x128xf32>
    %cst_28 = arith.constant dense<0.000000e+00> : vector<16x128xf32>
    %32 = tpu.matmul %29, %31, %cst_28 {dimension_numbers = #tpu.dot_dimension_numbers<[1], [0], [0], [1], [0, 0, 1, 1], [], []>} : vector<16x128xf32>, vector<128x128xf32>, vector<16x128xf32> -> vector<16x128xf32>
    %33 = arith.addf %28, %32 : vector<16x128xf32>
    %34 = vector.extract_strided_slice %24 {offsets = [2, 0], sizes = [16, 128], strides = [1, 1]} : vector<18x128xf32> to vector<16x128xf32>
    %c2_29 = arith.constant 2 : index
    %c0_30 = arith.constant 0 : index
    %c0_31 = arith.constant 0 : index
    %35 = vector.load %arg4[%c2_29, %c0_30, %c0_31] : memref<3x128x128xf32, #tpu.memory_space<vmem>>, vector<1x128x128xf32>
    %36 = vector.shape_cast %35 : vector<1x128x128xf32> to vector<128x128xf32>
    %cst_32 = arith.constant dense<0.000000e+00> : vector<16x128xf32>
    %37 = tpu.matmul %34, %36, %cst_32 {dimension_numbers = #tpu.dot_dimension_numbers<[1], [0], [0], [1], [0, 0, 1, 1], [], []>} : vector<16x128xf32>, vector<128x128xf32>, vector<16x128xf32> -> vector<16x128xf32>
    %38 = arith.addf %33, %37 : vector<16x128xf32>
    %c0_33 = arith.constant 0 : index
    %c0_34 = arith.constant 0 : index
    %39 = vector.load %arg5[%c0_33, %c0_34] : memref<1x128xf32, #tpu.memory_space<vmem>>, vector<1x128xf32>
    %40 = vector.broadcast %39 : vector<1x128xf32> to vector<16x128xf32>
    %41 = arith.addf %38, %40 : vector<16x128xf32>
    %cst_35 = arith.constant 0.000000e+00 : f32
    %42 = vector.broadcast %cst_35 : f32 to vector<16x128xf32>
    %43 = arith.maximumf %41, %42 : vector<16x128xf32>
    %44 = vector.extract_strided_slice %1 {offsets = [1, 0], sizes = [16, 128], strides = [1, 1]} : vector<18x128xf32> to vector<16x128xf32>
    %45 = arith.addf %43, %44 : vector<16x128xf32>
    %46 = vector.extract_strided_slice %45 {offsets = [0, 0], sizes = [16, 64], strides = [1, 1]} : vector<16x128xf32> to vector<16x64xf32>
    %47 = vector.extract_strided_slice %45 {offsets = [0, 64], sizes = [16, 64], strides = [1, 1]} : vector<16x128xf32> to vector<16x64xf32>
    %48 = arith.maximumf %46, %47 : vector<16x64xf32>
    %49 = vector.extract_strided_slice %48 {offsets = [0, 0], sizes = [1, 64], strides = [1, 1]} : vector<16x64xf32> to vector<1x64xf32>
    %50 = vector.extract_strided_slice %48 {offsets = [1, 0], sizes = [1, 64], strides = [1, 1]} : vector<16x64xf32> to vector<1x64xf32>
    %51 = arith.maximumf %49, %50 : vector<1x64xf32>
    %52 = vector.extract_strided_slice %48 {offsets = [2, 0], sizes = [1, 64], strides = [1, 1]} : vector<16x64xf32> to vector<1x64xf32>
    %53 = vector.extract_strided_slice %48 {offsets = [3, 0], sizes = [1, 64], strides = [1, 1]} : vector<16x64xf32> to vector<1x64xf32>
    %54 = arith.maximumf %52, %53 : vector<1x64xf32>
    %55 = vector.extract_strided_slice %48 {offsets = [4, 0], sizes = [1, 64], strides = [1, 1]} : vector<16x64xf32> to vector<1x64xf32>
    %56 = vector.extract_strided_slice %48 {offsets = [5, 0], sizes = [1, 64], strides = [1, 1]} : vector<16x64xf32> to vector<1x64xf32>
    %57 = arith.maximumf %55, %56 : vector<1x64xf32>
    %58 = vector.extract_strided_slice %48 {offsets = [6, 0], sizes = [1, 64], strides = [1, 1]} : vector<16x64xf32> to vector<1x64xf32>
    %59 = vector.extract_strided_slice %48 {offsets = [7, 0], sizes = [1, 64], strides = [1, 1]} : vector<16x64xf32> to vector<1x64xf32>
    %60 = arith.maximumf %58, %59 : vector<1x64xf32>
    %61 = vector.extract_strided_slice %48 {offsets = [8, 0], sizes = [1, 64], strides = [1, 1]} : vector<16x64xf32> to vector<1x64xf32>
    %62 = vector.extract_strided_slice %48 {offsets = [9, 0], sizes = [1, 64], strides = [1, 1]} : vector<16x64xf32> to vector<1x64xf32>
    %63 = arith.maximumf %61, %62 : vector<1x64xf32>
    %64 = vector.extract_strided_slice %48 {offsets = [10, 0], sizes = [1, 64], strides = [1, 1]} : vector<16x64xf32> to vector<1x64xf32>
    %65 = vector.extract_strided_slice %48 {offsets = [11, 0], sizes = [1, 64], strides = [1, 1]} : vector<16x64xf32> to vector<1x64xf32>
    %66 = arith.maximumf %64, %65 : vector<1x64xf32>
    %67 = vector.extract_strided_slice %48 {offsets = [12, 0], sizes = [1, 64], strides = [1, 1]} : vector<16x64xf32> to vector<1x64xf32>
    %68 = vector.extract_strided_slice %48 {offsets = [13, 0], sizes = [1, 64], strides = [1, 1]} : vector<16x64xf32> to vector<1x64xf32>
    %69 = arith.maximumf %67, %68 : vector<1x64xf32>
    %70 = vector.extract_strided_slice %48 {offsets = [14, 0], sizes = [1, 64], strides = [1, 1]} : vector<16x64xf32> to vector<1x64xf32>
    %71 = vector.extract_strided_slice %48 {offsets = [15, 0], sizes = [1, 64], strides = [1, 1]} : vector<16x64xf32> to vector<1x64xf32>
    %72 = arith.maximumf %70, %71 : vector<1x64xf32>
    %73 = tpu.concatenate %51, %54, %57, %60, %63, %66, %69, %72 in 0 : vector<1x64xf32>, vector<1x64xf32>, vector<1x64xf32>, vector<1x64xf32>, vector<1x64xf32>, vector<1x64xf32>, vector<1x64xf32>, vector<1x64xf32> -> vector<8x64xf32>
    %c0_36 = arith.constant 0 : index
    %c0_37 = arith.constant 0 : index
    %74 = vector.load %arg6[%c0_36, %c0_37] : memref<64x128xf32, #tpu.memory_space<vmem>>, vector<64x128xf32>
    %cst_38 = arith.constant dense<0.000000e+00> : vector<8x128xf32>
    %75 = tpu.matmul %73, %74, %cst_38 {dimension_numbers = #tpu.dot_dimension_numbers<[1], [0], [0], [1], [0, 0, 1, 1], [], []>} : vector<8x64xf32>, vector<64x128xf32>, vector<8x128xf32> -> vector<8x128xf32>
    %c0_39 = arith.constant 0 : index
    %c0_40 = arith.constant 0 : index
    %76 = vector.load %arg7[%c0_39, %c0_40] : memref<1x128xf32, #tpu.memory_space<vmem>>, vector<1x128xf32>
    %77 = vector.broadcast %76 : vector<1x128xf32> to vector<8x128xf32>
    %78 = arith.addf %75, %77 : vector<8x128xf32>
    %c0_41 = arith.constant 0 : index
    %c0_42 = arith.constant 0 : index
    %c0_43 = arith.constant 0 : index
    %79 = vector.load %arg8[%c0_41, %c0_42, %c0_43] : memref<1x8x128xf32, #tpu.memory_space<vmem>>, vector<1x8x128xf32>
    %80 = vector.shape_cast %79 : vector<1x8x128xf32> to vector<8x128xf32>
    %81 = vector.shape_cast %78 : vector<8x128xf32> to vector<1x8x128xf32>
    tpu.vector_store %arg8[%c0_41, %c0_42, %c0_43], %81 {strides = array<i32>} : memref<1x8x128xf32, #tpu.memory_space<vmem>>, vector<1x8x128xf32>,
    return
  }
  func.func @transform_0(%arg0: i32) -> (i32, i32, i32) {
    %c0_i32 = arith.constant 0 : i32
    %c0_i32_0 = arith.constant 0 : i32
    %c0_i32_1 = arith.constant 0 : i32
    return %arg0, %c0_i32, %c0_i32_0 : i32, i32, i32
  }
  func.func @transform_1(%arg0: i32) -> (i32, i32, i32) {
    %c0_i32 = arith.constant 0 : i32
    %c0_i32_0 = arith.constant 0 : i32
    %c0_i32_1 = arith.constant 0 : i32
    %c0_i32_2 = arith.constant 0 : i32
    return %c0_i32, %c0_i32_0, %c0_i32_1 : i32, i32, i32
  }
  func.func @transform_2(%arg0: i32) -> (i32, i32) {
    %c0_i32 = arith.constant 0 : i32
    %c0_i32_0 = arith.constant 0 : i32
    %c0_i32_1 = arith.constant 0 : i32
    return %c0_i32, %c0_i32_0 : i32, i32
  }
  func.func @transform_3(%arg0: i32) -> (i32, i32, i32) {
    %c0_i32 = arith.constant 0 : i32
    %c0_i32_0 = arith.constant 0 : i32
    %c0_i32_1 = arith.constant 0 : i32
    %c0_i32_2 = arith.constant 0 : i32
    return %c0_i32, %c0_i32_0, %c0_i32_1 : i32, i32, i32
  }
  func.func @transform_4(%arg0: i32) -> (i32, i32) {
    %c0_i32 = arith.constant 0 : i32
    %c0_i32_0 = arith.constant 0 : i32
    %c0_i32_1 = arith.constant 0 : i32
    return %c0_i32, %c0_i32_0 : i32, i32
  }
  func.func @transform_5(%arg0: i32) -> (i32, i32) {
    %c0_i32 = arith.constant 0 : i32
    %c0_i32_0 = arith.constant 0 : i32
    %c0_i32_1 = arith.constant 0 : i32
    return %c0_i32, %c0_i32_0 : i32, i32
  }
  func.func @transform_6(%arg0: i32) -> (i32, i32) {
    %c0_i32 = arith.constant 0 : i32
    %c0_i32_0 = arith.constant 0 : i32
    %c0_i32_1 = arith.constant 0 : i32
    return %c0_i32, %c0_i32_0 : i32, i32
  }
  func.func @transform_7(%arg0: i32) -> (i32, i32, i32) {
    %c0_i32 = arith.constant 0 : i32
    %c0_i32_0 = arith.constant 0 : i32
    %c0_i32_1 = arith.constant 0 : i32
    return %arg0, %c0_i32, %c0_i32_0 : i32, i32, i32
  }
}

</mosaic_0001>

<bundles_post_ra>
// kernel: tpu_custom_call.1
= control target key start
LH: loop header
LB: loop body
LE: loop exit
PB: predicated region body
PF: predicated region fallthrough
CT: control target
= control target key end

     0   :  { %12 = vsyncpa [#allocation4], 0  ;;  %s1421_s0 = inlined_call_operand.vmem [shape: f32[1,18,128], index: 0, kind: input, shape index: {}]   ;;  %s1422_s1 = inlined_call_operand.hbm [shape: f32[3,128,128], index: 1, kind: input, shape index: {}]   ;;  %s1423_s2 = inlined_call_operand.vmem [shape: f32[1,128], index: 2, kind: input, shape index: {}]   ;;  %s1424_s3 = inlined_call_operand.hbm [shape: f32[3,128,128], index: 3, kind: input, shape index: {}]   ;;  %s1425_s4 = inlined_call_operand.vmem [shape: f32[1,128], index: 4, kind: input, shape index: {}]   ;;  %s1426_s5 = inlined_call_operand.hbm [shape: f32[64,128], index: 5, kind: input, shape index: {}]   ;;  %s1427_s6 = inlined_call_operand.vmem [shape: f32[1,128], index: 6, kind: input, shape index: {}]   ;;  %s1428_s7 = inlined_call_operand.hbm [shape: f32[1,8,128], index: 7, kind: output, shape index: {}]  }
   0x1   :  { %13 = vsyncpa [#allocation7], 0 }
   0x2   :  { %14 = vsyncpa [#allocation5], 0  ;;  %s1290_s24 = smov [#allocation6]   ;;  %s1291_s26 = smov [#allocation3]  }
   0x3   :  { %s36_s25 = sshll.u32 %s1290_s24, 4  ;;  %s22_s27 = sshll.u32 %s1291_s26, 4  ;;  %s37_s25 = int_to_ptr.vmem [resolvable:$true] %s36_s25  ;;  %s23_s27 = int_to_ptr.vmem [resolvable:$true] %s22_s27 }
   0x4   :  { %s1212_s28 = scalar_lea.vmem %s37_s25, 6144  ;;  %p1217_p1 = scmp.lt.s32.totalorder %s37_s25, %s37_s25 }
   0x5   :  { %p1213_p0 = scmp.ne.s32.totalorder %s37_s25, %s1212_s28  ;;  %p1218_p2 = scmp.lt.s32.totalorder %s1212_s28, %s1212_s28 }
   0x7   :  { %p1219_p3 = por %p1218_p2, %p1217_p1 }
   0x9   :  { %p1220_p4 = pnand %p1219_p3, %p1213_p0 }
   0xb   :  { %1223 = shalt.err (!%p1220_p4)
}
   0xc   :  { %s1292_s29 = smov 128   ;;  %s1293_s30 = smov 8  }
   0xd   :  { %42 = dma.hbm_to_vmem [thread:$0]  %s1424_s3, 6144, %s37_s25, [#allocation7], %s1292_s29, %s1292_s29, %s1293_s30  }
   0xe   :  { %s1232_s10 = scalar_lea.vmem %s23_s27, 6144  ;;  %p1237_p6 = scmp.lt.s32.totalorder %s23_s27, %s23_s27 }
   0xf   :  { %p1233_p5 = scmp.ne.s32.totalorder %s23_s27, %s1232_s10  ;;  %p1238_p7 = scmp.lt.s32.totalorder %s1232_s10, %s1232_s10 }
  0x11   :  { %p1239_p8 = por %p1238_p7, %p1237_p6 }
  0x13   :  { %p1240_p9 = pnand %p1239_p8, %p1233_p5 }
  0x15   :  { %1243 = shalt.err (!%p1240_p9)
}
  0x16   :  { %28 = dma.hbm_to_vmem [thread:$0]  %s1422_s1, 6144, %s23_s27, [#allocation4], %s1292_s29, %s1292_s29, %s1293_s30  }
  0x17   :  { %s1294_s13 = smov [#allocation8]  }
  0x18   :  { %s50_s14 = sshll.u32 %s1294_s13, 4  ;;  %s51_s14 = int_to_ptr.vmem [resolvable:$true] %s50_s14 }
  0x19   :  { %s1252_s15 = scalar_lea.vmem %s51_s14, 1024  ;;  %p1257_p11 = scmp.lt.s32.totalorder %s51_s14, %s51_s14 }
  0x1a   :  { %p1253_p10 = scmp.ne.s32.totalorder %s51_s14, %s1252_s15  ;;  %p1258_p12 = scmp.lt.s32.totalorder %s1252_s15, %s1252_s15 }
  0x1c   :  { %p1259_p13 = por %p1258_p12, %p1257_p11 }
  0x1e   :  { %p1260_p0 = pnand %p1259_p13, %p1253_p10 }
  0x20   :  { %1263 = shalt.err (!%p1260_p0)
}
  0x21   :  { %56 = dma.hbm_to_vmem [thread:$0]  %s1426_s5, 1024, %s51_s14, [#allocation7], %s1292_s29, %s1292_s29, %s1293_s30  }
  0x22   :  { %1284 = dma.done.wait [#allocation4], 6144  }
  0x23   :  { %1285 = vsyncadd [#allocation4], 4294961152 }
  0x24   :  { %1286 = dma.done.wait [#allocation7], 7168  }
  0x25   :  { %1287 = vsyncadd [#allocation7], 4294960128  ;;  %v103_v0 = vld [vmem:[#allocation3 + $0xf8] sm:$0xff]  ;;  %v102_v2 = vld [vmem:[#allocation3 + $0xf0] sm:$0xff]  ;;  %vm107_vm0 = vcmask 1046528   ;;  %vm282_vm1 = vcmask 1045504  }
  0x26   :  { %v86_v1 = vld [vmem:[#allocation3 + $0x78] sm:$0xff]  ;;  %966 = vmatprep.subr.mxu0 %v103_v0  ;;  %v85_v3 = vld [vmem:[#allocation3 + $0x70] sm:$0xff]  ;;  %v101_v4 = vld [vmem:[#allocation3 + $0xe8] sm:$0xff]  ;;  %vm1296_vm2 = vmmov 0   ;;  %vm727_vm3 = vcmask 1040384   ;;  %vm729_vm4 = vcmask 1041408  }
  0x27   :  { %1001 = vmatprep.subr.mxu1 %v86_v1  ;;  %967 = vmatpush3.msra.mxu0 %v103_v0  ;;  %v84_v5 = vld [vmem:[#allocation3 + $0x68] sm:$0xff]  ;;  %v100_v6 = vld [vmem:[#allocation3 + $0xe0] sm:$0xff]  ;;  %v99_v8 = vld [vmem:[#allocation3 + $0xd8] sm:$0xff]  ;;  %vm731_vm5 = vcmask 1042432   ;;  %vm733_vm6 = vcmask 1043456   ;;  %vm735_vm7 = vcmask 1044480  }
  0x28   :  { %1002 = vmatpush3.msra.mxu1 %v86_v1  ;;  %968 = vmatprep.subr.mxu0 %v102_v2  ;;  %v83_v7 = vld [vmem:[#allocation3 + $0x60] sm:$0xff]  ;;  %v82_v9 = vld [vmem:[#allocation3 + $0x58] sm:$0xff]  ;;  %v98_v10 = vld [vmem:[#allocation3 + $0xd0] sm:$0xff]  ;;  %vm754_vm8 = vcmask 523264   ;;  %s1298_s25 = smov [#allocation9]  }
  0x29   :  { %1003 = vmatprep.subr.mxu1 %v85_v3  ;;  %969 = vmatpush3.msra.mxu0 %v102_v2  ;;  %v81_v11 = vld [vmem:[#allocation3 + $0x50] sm:$0xff]  ;;  %v97_v12 = vld [vmem:[#allocation3 + $0xc8] sm:$0xff]  ;;  %v96_v14 = vld [vmem:[#allocation3 + $0xc0] sm:$0xff]  ;;  %s835_s26 = sshll.u32 %s1298_s25, 4  ;;  %s836_s26 = int_to_ptr.vmem [resolvable:$true] %s835_s26 }
  0x2a   :  { %1004 = vmatpush3.msra.mxu1 %v85_v3  ;;  %970 = vmatprep.subr.mxu0 %v101_v4  ;;  %v80_v13 = vld [vmem:[#allocation3 + $0x48] sm:$0xff]  ;;  %v79_v15 = vld [vmem:[#allocation3 + $0x40] sm:$0xff]  ;;  %v95_v16 = vld [vmem:[#allocation3 + $0xb8] sm:$0xff]  ;;  %s1264_s27 = scalar_lea.vmem %s836_s26, 128  ;;  %p1269_p2 = scmp.lt.s32.totalorder %s836_s26, %s836_s26 }
  0x2b   :  { %1005 = vmatprep.subr.mxu1 %v84_v5  ;;  %971 = vmatpush3.msra.mxu0 %v101_v4  ;;  %v78_v17 = vld [vmem:[#allocation3 + $0x38] sm:$0xff]  ;;  %v94_v18 = vld [vmem:[#allocation3 + $0xb0] sm:$0xff]  ;;  %v93_v20 = vld [vmem:[#allocation3 + $0xa8] sm:$0xff]  ;;  %p1265_p1 = scmp.ne.s32.totalorder %s836_s26, %s1264_s27  ;;  %p1270_p3 = scmp.lt.s32.totalorder %s1264_s27, %s1264_s27 }
  0x2c   :  { %1006 = vmatpush3.msra.mxu1 %v84_v5  ;;  %972 = vmatprep.subr.mxu0 %v100_v6  ;;  %v77_v19 = vld [vmem:[#allocation3 + $0x30] sm:$0xff]  ;;  %v76_v21 = vld [vmem:[#allocation3 + $0x28] sm:$0xff]  ;;  %v92_v22 = vld [vmem:[#allocation3 + $0xa0] sm:$0xff] }
  0x2d   :  { %1007 = vmatprep.subr.mxu1 %v83_v7  ;;  %973 = vmatpush3.msra.mxu0 %v100_v6  ;;  %v75_v23 = vld [vmem:[#allocation3 + $0x20] sm:$0xff]  ;;  %v91_v24 = vld [vmem:[#allocation3 + $0x98] sm:$0xff]  ;;  %v68_v26 = vld [vmem:[%s1421_s0] sm:$0xff]  ;;  %p1271_p4 = por %p1270_p3, %p1269_p2 }
  0x2e   :  { %1008 = vmatpush3.msra.mxu1 %v83_v7  ;;  %974 = vmatprep.subr.mxu0 %v99_v8  ;;  %v74_v25 = vld [vmem:[#allocation3 + $0x18] sm:$0xff]  ;;  %v1354_v27 = vld [vmem:[%s1421_s0 + $0x8] sm:$0xff]  ;;  %v108_v31 = vrot.slane %v68_v26, 1  ;;  %v89_v33 = vld [vmem:[#allocation3 + $0x88] sm:$0xff]  ;;  %v283_v38 = vrot.slane %v68_v26, 2 }
  0x2f   :  { %1009 = vmatprep.subr.mxu1 %v82_v9  ;;  %975 = vmatpush3.msra.mxu0 %v99_v8  ;;  %v90_v28 = vld [vmem:[#allocation3 + $0x90] sm:$0xff]  ;;  %v1359_v30 = vld [vmem:[%s1421_s0 + $0x10] sm:$0x3]  ;;  %v109_v32 = vrot.slane %v1354_v27, 1  ;;  %v72_v34 = vld [vmem:[#allocation3 + $0x8] sm:$0xff]  ;;  %v284_v39 = vrot.slane %v1354_v27, 2  ;;  %p1272_p5 = pnand %p1271_p4, %p1265_p1 }
  0x30   :  { %1010 = vmatpush3.msra.mxu1 %v82_v9  ;;  %976 = vmatprep.subr.mxu0 %v98_v10  ;;  %v73_v29 = vld [vmem:[#allocation3 + $0x10] sm:$0xff]  ;;  %v111_v35 = vrot.slane %v1359_v30, 1  ;;  %v88_v36 = vld [vmem:[#allocation3 + $0x80] sm:$0xff]  ;;  %v281_v42 = vld [vmem:[#allocation3 + $0x178] sm:$0xff]  ;;  %v286_v58 = vrot.slane %v1359_v30, 2 }
  0x31   :  { %1011 = vmatprep.subr.mxu1 %v81_v11  ;;  %977 = vmatpush3.msra.mxu0 %v98_v10  ;;  %v71_v37 = vld [vmem:[#allocation3] sm:$0xff]  ;;  %v1365_v40 = vsel %vm107_vm0, %v108_v31, %v109_v32  ;;  %v285_v43 = vsel %vm282_vm1, %v283_v38, %v284_v39  ;;  %v280_v44 = vld [vmem:[#allocation3 + $0x170] sm:$0xff]  ;;  %v279_v45 = vld [vmem:[#allocation3 + $0x168] sm:$0xff] }
  0x32   :  { %1012 = vmatpush3.msra.mxu1 %v81_v11  ;;  %978 = vmatprep.subr.mxu0 %v97_v12  ;;  %v1368_v41 = vsel %vm107_vm0, %v109_v32, %v111_v35  ;;  %v278_v46 = vld [vmem:[#allocation3 + $0x160] sm:$0xff]  ;;  %v277_v47 = vld [vmem:[#allocation3 + $0x158] sm:$0xff]  ;;  %v276_v48 = vld [vmem:[#allocation3 + $0x150] sm:$0xff]  ;;  %v287_v60 = vsel %vm282_vm1, %v284_v39, %v286_v58 }
  0x33   :  { %1013 = vmatprep.subr.mxu1 %v80_v13  ;;  %979 = vmatpush3.msra.mxu0 %v97_v12  ;;  %v275_v49 = vld [vmem:[#allocation3 + $0x148] sm:$0xff]  ;;  %v274_v50 = vld [vmem:[#allocation3 + $0x140] sm:$0xff]  ;;  %v273_v51 = vld [vmem:[#allocation3 + $0x138] sm:$0xff] }
  0x34   :  { %1014 = vmatpush3.msra.mxu1 %v80_v13  ;;  %980 = vmatprep.subr.mxu0 %v96_v14  ;;  %v272_v52 = vld [vmem:[#allocation3 + $0x130] sm:$0xff]  ;;  %v271_v53 = vld [vmem:[#allocation3 + $0x128] sm:$0xff]  ;;  %v270_v54 = vld [vmem:[#allocation3 + $0x120] sm:$0xff] }
  0x35   :  { %1015 = vmatprep.subr.mxu1 %v79_v15  ;;  %981 = vmatpush3.msra.mxu0 %v96_v14  ;;  %v269_v55 = vld [vmem:[#allocation3 + $0x118] sm:$0xff]  ;;  %v268_v56 = vld [vmem:[#allocation3 + $0x110] sm:$0xff]  ;;  %v267_v57 = vld [vmem:[#allocation3 + $0x108] sm:$0xff] }
  0x36   :  { %1016 = vmatpush3.msra.mxu1 %v79_v15  ;;  %982 = vmatprep.subr.mxu0 %v95_v16  ;;  %v266_v59 = vld [vmem:[#allocation3 + $0x100] sm:$0xff]  ;;  %v401_v61 = vld [vmem:[#allocation6 + $0x78] sm:$0xff]  ;;  %v400_v63 = vld [vmem:[#allocation6 + $0x70] sm:$0xff] }
  0x37   :  { %1017 = vmatprep.subr.mxu1 %v78_v17  ;;  %983 = vmatpush3.msra.mxu0 %v95_v16  ;;  %v418_v62 = vld [vmem:[#allocation6 + $0xf8] sm:$0xff]  ;;  %v417_v0 = vld [vmem:[#allocation6 + $0xf0] sm:$0xff]  ;;  %v399_v1 = vld [vmem:[#allocation6 + $0x68] sm:$0xff] }
  0x38   :  { %1018 = vmatpush3.msra.mxu1 %v78_v17  ;;  %984 = vmatprep.subr.mxu0 %v94_v18  ;;  %v416_v2 = vld [vmem:[#allocation6 + $0xe8] sm:$0xff]  ;;  %v398_v3 = vld [vmem:[#allocation6 + $0x60] sm:$0xff]  ;;  %v397_v5 = vld [vmem:[#allocation6 + $0x58] sm:$0xff] }
  0x39   :  { %1019 = vmatprep.subr.mxu1 %v77_v19  ;;  %985 = vmatpush3.msra.mxu0 %v94_v18  ;;  %v415_v4 = vld [vmem:[#allocation6 + $0xe0] sm:$0xff]  ;;  %v414_v6 = vld [vmem:[#allocation6 + $0xd8] sm:$0xff]  ;;  %v396_v7 = vld [vmem:[#allocation6 + $0x50] sm:$0xff]  ;;  %v1295_v18 = vmov 0.0  }
  0x3a   :  { %1020 = vmatpush3.msra.mxu1 %v77_v19  ;;  %986 = vmatprep.subr.mxu0 %v93_v20  ;;  %v413_v8 = vld [vmem:[#allocation6 + $0xd0] sm:$0xff]  ;;  %v395_v9 = vld [vmem:[#allocation6 + $0x48] sm:$0xff]  ;;  %v394_v11 = vld [vmem:[#allocation6 + $0x40] sm:$0xff]  ;;  %379 = vst [vmem:[#allocation2 + $0x8] sm:$0xff] %v1295_v18 }
  0x3b   :  { %1021 = vmatprep.subr.mxu1 %v76_v21  ;;  %987 = vmatpush3.msra.mxu0 %v93_v20  ;;  %v412_v10 = vld [vmem:[#allocation6 + $0xc8] sm:$0xff]  ;;  %v411_v12 = vld [vmem:[#allocation6 + $0xc0] sm:$0xff]  ;;  %v393_v13 = vld [vmem:[#allocation6 + $0x38] sm:$0xff]  ;;  %380 = vst [vmem:[#allocation2 + $0x10] sm:$0x3] %v1295_v18 }
  0x3c   :  { %1022 = vmatpush3.msra.mxu1 %v76_v21  ;;  %988 = vmatprep.subr.mxu0 %v92_v22  ;;  %v410_v14 = vld [vmem:[#allocation6 + $0xb8] sm:$0xff]  ;;  %v392_v15 = vld [vmem:[#allocation6 + $0x30] sm:$0xff]  ;;  %v391_v17 = vld [vmem:[#allocation6 + $0x28] sm:$0xff]  ;;  %378 = vst [vmem:[#allocation2] sm:$0xff] %v1295_v18 }
  0x3d   :  { %1023 = vmatprep.subr.mxu1 %v75_v23  ;;  %989 = vmatpush3.msra.mxu0 %v92_v22  ;;  %v409_v16 = vld [vmem:[#allocation6 + $0xb0] sm:$0xff]  ;;  %v408_v19 = vld [vmem:[#allocation6 + $0xa8] sm:$0xff]  ;;  %v390_v20 = vld [vmem:[#allocation6 + $0x20] sm:$0xff] }
  0x3e   :  { %1024 = vmatpush3.msra.mxu1 %v75_v23  ;;  %990 = vmatprep.subr.mxu0 %v91_v24  ;;  %v407_v21 = vld [vmem:[#allocation6 + $0xa0] sm:$0xff]  ;;  %v389_v22 = vld [vmem:[#allocation6 + $0x18] sm:$0xff]  ;;  %v594_v58 = vld [vmem:[#allocation6 + $0x170] sm:$0xff] }
  0x3f   :  { %1025 = vmatprep.subr.mxu1 %v74_v25  ;;  %991 = vmatpush3.msra.mxu0 %v91_v24  ;;  %v406_v23 = vld [vmem:[#allocation6 + $0x98] sm:$0xff]  ;;  %v388_v24 = vld [vmem:[#allocation6 + $0x10] sm:$0xff] }
  0x40   :  { %1026 = vmatpush3.msra.mxu1 %v74_v25  ;;  %992 = vmatprep.subr.mxu0 %v90_v28  ;;  %v405_v25 = vld [vmem:[#allocation6 + $0x90] sm:$0xff]  ;;  %v595_v30 = vld [vmem:[#allocation6 + $0x178] sm:$0xff] }
  0x41   :  { %1027 = vmatprep.subr.mxu1 %v73_v29  ;;  %993 = vmatpush3.msra.mxu0 %v90_v28  ;;  %v386_v28 = vld [vmem:[#allocation6] sm:$0xff] }
  0x42   :  { %1028 = vmatpush3.msra.mxu1 %v73_v29  ;;  %994 = vmatprep.subr.mxu0 %v89_v33  ;;  %v403_v29 = vld [vmem:[#allocation6 + $0x80] sm:$0xff] }
  0x43   :  { %1029 = vmatprep.subr.mxu1 %v72_v34  ;;  %995 = vmatpush3.msra.mxu0 %v89_v33 }
  0x44   :  { %1030 = vmatpush3.msra.mxu1 %v72_v34  ;;  %996 = vmatprep.subr.mxu0 %v88_v36 }
  0x45   :  { %1031 = vmatprep.subr.mxu1 %v71_v37  ;;  %997 = vmatpush3.msra.mxu0 %v88_v36 }
  0x46   :  { %998 = vmatprep.mubr.f32.mxu0 %v1365_v40  ;;  %1032 = vmatpush3.msra.mxu1 %v71_v37  ;;  %v845_v37 = vld [vmem:[%s1423_s2] ss:$0 sm:$0xff] }
  0x47   :  { %1033 = vmatprep.mubr.f32.mxu1 %v68_v26  ;;  %999 = vmatmul.mubr.f32.vlgmr.msra.gmra.mxu0 %v1368_v41  ;;  %v387_v26 = vld [vmem:[#allocation6 + $0x8] sm:$0xff] }
  0x48   :  { %1034 = vmatmul.mubr.f32.vlgmr.msra.gmra.mxu1 %v1354_v27  ;;  %1036 = vmatprep.subr.mxu0 %v281_v42  ;;  %v404_v27 = vld [vmem:[#allocation6 + $0x88] sm:$0xff] }
  0x49   :  { %1068 = vmatprep.mubr.f32.mxu0 %v285_v43  ;;  %1037 = vmatpush3.msra.mxu0 %v281_v42 }
  0x4a   :  { %1038 = vmatprep.subr.mxu0 %v280_v44  ;;  %1071 = vmatprep.subr.mxu1 %v418_v62 }
  0x4b   :  { %1039 = vmatpush3.msra.mxu0 %v280_v44  ;;  %1072 = vmatpush3.msra.mxu1 %v418_v62  ;;  %v591_v62 = vld [vmem:[#allocation6 + $0x158] sm:$0xff] }
  0x4c   :  { %1040 = vmatprep.subr.mxu0 %v279_v45  ;;  %1073 = vmatprep.subr.mxu1 %v417_v0 }
  0x4d   :  { %1041 = vmatpush3.msra.mxu0 %v279_v45  ;;  %1074 = vmatpush3.msra.mxu1 %v417_v0  ;;  %v589_v0 = vld [vmem:[#allocation6 + $0x148] sm:$0xff] }
  0x4e   :  { %1042 = vmatprep.subr.mxu0 %v278_v46  ;;  %1075 = vmatprep.subr.mxu1 %v416_v2 }
  0x4f   :  { %1043 = vmatpush3.msra.mxu0 %v278_v46  ;;  %1076 = vmatpush3.msra.mxu1 %v416_v2  ;;  %v587_v2 = vld [vmem:[#allocation6 + $0x138] sm:$0xff] }
  0x50   :  { %1044 = vmatprep.subr.mxu0 %v277_v47  ;;  %1077 = vmatprep.subr.mxu1 %v415_v4 }
  0x51   :  { %1045 = vmatpush3.msra.mxu0 %v277_v47  ;;  %1078 = vmatpush3.msra.mxu1 %v415_v4  ;;  %v585_v4 = vld [vmem:[#allocation6 + $0x128] sm:$0xff] }
  0x52   :  { %1046 = vmatprep.subr.mxu0 %v276_v48  ;;  %1079 = vmatprep.subr.mxu1 %v414_v6 }
  0x53   :  { %1047 = vmatpush3.msra.mxu0 %v276_v48  ;;  %1080 = vmatpush3.msra.mxu1 %v414_v6  ;;  %v583_v6 = vld [vmem:[#allocation6 + $0x118] sm:$0xff] }
  0x54   :  { %1048 = vmatprep.subr.mxu0 %v275_v49  ;;  %1081 = vmatprep.subr.mxu1 %v413_v8 }
  0x55   :  { %1049 = vmatpush3.msra.mxu0 %v275_v49  ;;  %1082 = vmatpush3.msra.mxu1 %v413_v8  ;;  %v581_v8 = vld [vmem:[#allocation6 + $0x108] sm:$0xff] }
  0x56   :  { %1050 = vmatprep.subr.mxu0 %v274_v50  ;;  %1083 = vmatprep.subr.mxu1 %v412_v10 }
  0x57   :  { %1051 = vmatpush3.msra.mxu0 %v274_v50  ;;  %1084 = vmatpush3.msra.mxu1 %v412_v10 }
  0x58   :  { %1052 = vmatprep.subr.mxu0 %v273_v51  ;;  %1085 = vmatprep.subr.mxu1 %v411_v12 }
  0x59   :  { %1053 = vmatpush3.msra.mxu0 %v273_v51  ;;  %1086 = vmatpush3.msra.mxu1 %v411_v12 }
  0x5a   :  { %1054 = vmatprep.subr.mxu0 %v272_v52  ;;  %1087 = vmatprep.subr.mxu1 %v410_v14 }
  0x5b   :  { %1055 = vmatpush3.msra.mxu0 %v272_v52  ;;  %1088 = vmatpush3.msra.mxu1 %v410_v14 }
  0x5c   :  { %1056 = vmatprep.subr.mxu0 %v271_v53  ;;  %1089 = vmatprep.subr.mxu1 %v409_v16 }
  0x5d   :  { %1057 = vmatpush3.msra.mxu0 %v271_v53  ;;  %1090 = vmatpush3.msra.mxu1 %v409_v16 }
  0x5e   :  { %1058 = vmatprep.subr.mxu0 %v270_v54  ;;  %1091 = vmatprep.subr.mxu1 %v408_v19 }
  0x5f   :  { %1059 = vmatpush3.msra.mxu0 %v270_v54  ;;  %1092 = vmatpush3.msra.mxu1 %v408_v19 }
  0x60   :  { %1060 = vmatprep.subr.mxu0 %v269_v55  ;;  %1093 = vmatprep.subr.mxu1 %v407_v21 }
  0x61   :  { %1061 = vmatpush3.msra.mxu0 %v269_v55  ;;  %1094 = vmatpush3.msra.mxu1 %v407_v21 }
  0x62   :  { %1062 = vmatprep.subr.mxu0 %v268_v56  ;;  %1095 = vmatprep.subr.mxu1 %v406_v23 }
  0x63   :  { %1063 = vmatpush3.msra.mxu0 %v268_v56  ;;  %1096 = vmatpush3.msra.mxu1 %v406_v23  ;;  %v846_v23 = vld [vmem:[%s1425_s4] ss:$0 sm:$0xff]  ;;  %s1297_s4 = smov 64  }
  0x64   :  { %1064 = vmatprep.subr.mxu0 %v267_v57  ;;  %1097 = vmatprep.subr.mxu1 %v405_v25 }
  0x65   :  { %1065 = vmatpush3.msra.mxu0 %v267_v57  ;;  %1098 = vmatpush3.msra.mxu1 %v405_v25  ;;  %v744_v25 = vld [vmem:[#allocation8 + $0x28] sm:$0xff] }
  0x66   :  { %1066 = vmatprep.subr.mxu0 %v266_v59  ;;  %1099 = vmatprep.subr.mxu1 %v404_v27 }
  0x67   :  { %1067 = vmatpush3.msra.mxu0 %v266_v59  ;;  %1100 = vmatpush3.msra.mxu1 %v404_v27  ;;  %v743_v27 = vld [vmem:[#allocation8 + $0x20] sm:$0xff] }
  0x68   :  { %1069 = vmatmul.mubr.f32.vlgmr.msra.gmra.mxu0 %v287_v60  ;;  %1106 = vmatprep.subr.mxu0 %v401_v61  ;;  %v593_v60 = vld [vmem:[#allocation6 + $0x168] sm:$0xff] }
  0x69   :  { %1107 = vmatpush3.msra.mxu0 %v401_v61  ;;  %1101 = vmatprep.subr.mxu1 %v403_v29  ;;  %v592_v61 = vld [vmem:[#allocation6 + $0x160] sm:$0xff] }
  0x6a   :  { %1108 = vmatprep.subr.mxu0 %v400_v63  ;;  %1102 = vmatpush3.msra.mxu1 %v403_v29 }
  0x6b   :  { %1109 = vmatpush3.msra.mxu0 %v400_v63  ;;  %1141 = vmatprep.subr.mxu1 %v595_v30  ;;  %v590_v63 = vld [vmem:[#allocation6 + $0x150] sm:$0xff] }
  0x6c   :  { %1110 = vmatprep.subr.mxu0 %v399_v1 }
  0x6d   :  { %1111 = vmatpush3.msra.mxu0 %v399_v1  ;;  %v588_v1 = vld [vmem:[#allocation6 + $0x140] sm:$0xff] }
  0x6e   :  { %1112 = vmatprep.subr.mxu0 %v398_v3 }
  0x6f   :  { %1113 = vmatpush3.msra.mxu0 %v398_v3  ;;  %v586_v3 = vld [vmem:[#allocation6 + $0x130] sm:$0xff] }
  0x70   :  { %1114 = vmatprep.subr.mxu0 %v397_v5 }
  0x71   :  { %1115 = vmatpush3.msra.mxu0 %v397_v5  ;;  %v584_v5 = vld [vmem:[#allocation6 + $0x120] sm:$0xff] }
  0x72   :  { %1116 = vmatprep.subr.mxu0 %v396_v7 }
  0x73   :  { %1117 = vmatpush3.msra.mxu0 %v396_v7  ;;  %v582_v7 = vld [vmem:[#allocation6 + $0x110] sm:$0xff] }
  0x74   :  { %1118 = vmatprep.subr.mxu0 %v395_v9 }
  0x75   :  { %1119 = vmatpush3.msra.mxu0 %v395_v9  ;;  %v580_v9 = vld [vmem:[#allocation6 + $0x100] sm:$0xff] }
  0x76   :  { %1120 = vmatprep.subr.mxu0 %v394_v11 }
  0x77   :  { %1121 = vmatpush3.msra.mxu0 %v394_v11 }
  0x78   :  { %1122 = vmatprep.subr.mxu0 %v393_v13 }
  0x79   :  { %1123 = vmatpush3.msra.mxu0 %v393_v13 }
  0x7a   :  { %1124 = vmatprep.subr.mxu0 %v392_v15 }
  0x7b   :  { %1125 = vmatpush3.msra.mxu0 %v392_v15  ;;  %v746_v15 = vld [vmem:[#allocation8 + $0x38] sm:$0xff] }
  0x7c   :  { %1126 = vmatprep.subr.mxu0 %v391_v17 }
  0x7d   :  { %1127 = vmatpush3.msra.mxu0 %v391_v17 }
  0x7e   :  { %1128 = vmatprep.subr.mxu0 %v390_v20 }
  0x7f   :  { %1129 = vmatpush3.msra.mxu0 %v390_v20  ;;  %v745_v20 = vld [vmem:[#allocation8 + $0x30] sm:$0xff] }
  0x80   :  { %1130 = vmatprep.subr.mxu0 %v389_v22 }
  0x81   :  { %1131 = vmatpush3.msra.mxu0 %v389_v22 }
  0x82   :  { %1132 = vmatprep.subr.mxu0 %v388_v24 }
  0x83   :  { %1133 = vmatpush3.msra.mxu0 %v388_v24 }
  0x84   :  { %1134 = vmatprep.subr.mxu0 %v387_v26 }
  0x85   :  { %1135 = vmatpush3.msra.mxu0 %v387_v26 }
  0x86   :  { %1136 = vmatprep.subr.mxu0 %v386_v28 }
  0x87   :  { %1137 = vmatpush3.msra.mxu0 %v386_v28 }
  0x88   :  { %1176 = vmatprep.subr.mxu0 %v1295_v18 }
 0x107   :  { %v1000_v31 = vpop.f32.mrf.mxu0 }
 0x108   :  { %v1035_v32 = vpop.f32.mrf.mxu1 }
 0x109   :  { %v181_v33 = vpop.f32.mrf.mxu0  ;;  %v262_v35 = vadd.f32 %v1035_v32, %v1000_v31  ;;  %v741_v32 = vld [vmem:[#allocation8 + $0x10] sm:$0xff] }
 0x10a   :  { %v256_v34 = vpop.f32.mrf.mxu1 }
 0x10b   :  { %v257_v38 = vadd.f32 %v256_v34, %v181_v33  ;;  %v740_v33 = vld [vmem:[#allocation8 + $0x8] sm:$0xff] }
 0x128   :  { %v1070_v36 = vpop.f32.mrf.mxu0 }
 0x129   :  { %v366_v39 = vadd.f32 %v1070_v36, %v262_v35  ;;  %v739_v36 = vld [vmem:[#allocation8] sm:$0xff] }
 0x12a   :  { %v356_v42 = vpop.f32.mrf.mxu0 }
 0x12b   :  { %v375_v43 = vadd.f32 %v845_v37, %v366_v39  ;;  %v365_v44 = vadd.f32 %v356_v42, %v257_v38 }
 0x12d   :  { %v377_v45 = vmax.f32 %v375_v43, 0.0  ;;  %v374_v46 = vadd.f32 %v845_v37, %v365_v44 }
 0x12f   :  { %382 = vst [vmem:[#allocation2 + $0x9] sm:$0xff] %v377_v45  ;;  %v376_v47 = vmax.f32 %v374_v46, 0.0 }
 0x131   :  { %381 = vst [vmem:[#allocation2 + $0x1] sm:$0xff] %v376_v47 }
 0x136   :  { %v1387_v48 = vld [vmem:[#allocation2 + $0x10] sm:$0x3] }
 0x137   :  { %v425_v51 = vrot.slane %v1387_v48, 1  ;;  %v599_v10 = vrot.slane %v1387_v48, 2 }
 0x138   :  { %v383_v49 = vld [vmem:[#allocation2] sm:$0xff]  ;;  %v1389_v50 = vld [vmem:[#allocation2 + $0x8] sm:$0xff] }
 0x139   :  { %v422_v52 = vrot.slane %v383_v49, 1  ;;  %1138 = vmatprep.mubr.f32.mxu0 %v383_v49  ;;  %v596_v53 = vrot.slane %v383_v49, 2  ;;  %v423_v54 = vrot.slane %v1389_v50, 1  ;;  %v597_v55 = vrot.slane %v1389_v50, 2 }
 0x13a   :  { %1139 = vmatmul.mubr.f32.vlgmr.msra.gmra.mxu0 %v1389_v50 }
 0x13b   :  { %v424_v56 = vsel %vm107_vm0, %v422_v52, %v423_v54  ;;  %v426_v57 = vsel %vm107_vm0, %v423_v54, %v425_v51  ;;  %v598_v59 = vsel %vm282_vm1, %v596_v53, %v597_v55  ;;  %v600_v11 = vsel %vm282_vm1, %v597_v55, %v599_v10  ;;  %1177 = vmatpush3.msra.mxu0 %v746_v15 }
 0x13c   :  { %1103 = vmatprep.mubr.f32.mxu1 %v424_v56  ;;  %1178 = vmatprep.subr.mxu0 %v1295_v18 }
 0x13d   :  { %1104 = vmatmul.mubr.f32.vlgmr.msra.gmra.mxu1 %v426_v57  ;;  %1179 = vmatpush3.msra.mxu0 %v745_v20 }
 0x13e   :  { %1142 = vmatpush3.msra.mxu1 %v595_v30  ;;  %1173 = vmatprep.mubr.f32.mxu1 %v598_v59  ;;  %v742_v30 = vld [vmem:[#allocation8 + $0x18] sm:$0xff]  ;;  %v847_v59 = vld [vmem:[%s1427_s6] ss:$0 sm:$0xff] }
 0x13f   :  { %1143 = vmatprep.subr.mxu1 %v594_v58  ;;  %1180 = vmatprep.subr.mxu0 %v1295_v18 }
 0x140   :  { %1144 = vmatpush3.msra.mxu1 %v594_v58  ;;  %1181 = vmatpush3.msra.mxu0 %v744_v25 }
 0x141   :  { %1145 = vmatprep.subr.mxu1 %v593_v60  ;;  %1182 = vmatprep.subr.mxu0 %v1295_v18 }
 0x142   :  { %1146 = vmatpush3.msra.mxu1 %v593_v60  ;;  %1183 = vmatpush3.msra.mxu0 %v743_v27 }
 0x143   :  { %1147 = vmatprep.subr.mxu1 %v592_v61  ;;  %1184 = vmatprep.subr.mxu0 %v1295_v18 }
 0x144   :  { %1148 = vmatpush3.msra.mxu1 %v592_v61  ;;  %1185 = vmatpush3.msra.mxu0 %v742_v30 }
 0x145   :  { %1149 = vmatprep.subr.mxu1 %v591_v62  ;;  %1186 = vmatprep.subr.mxu0 %v1295_v18 }
 0x146   :  { %1150 = vmatpush3.msra.mxu1 %v591_v62  ;;  %1187 = vmatpush3.msra.mxu0 %v741_v32 }
 0x147   :  { %1151 = vmatprep.subr.mxu1 %v590_v63  ;;  %1192 = vmatprep.mubr.msk.f32.mxu0 %vm1296_vm2, %v1295_v18 }
 0x148   :  { %1152 = vmatpush3.msra.mxu1 %v590_v63  ;;  %1188 = vmatprep.subr.mxu0 %v1295_v18 }
 0x149   :  { %1153 = vmatprep.subr.mxu1 %v589_v0  ;;  %1189 = vmatpush3.msra.mxu0 %v740_v33 }
 0x14a   :  { %1154 = vmatpush3.msra.mxu1 %v589_v0  ;;  %1190 = vmatprep.subr.mxu0 %v1295_v18 }
 0x14b   :  { %1155 = vmatprep.subr.mxu1 %v588_v1  ;;  %1191 = vmatpush3.msra.mxu0 %v739_v36 }
 0x14c   :  { %1156 = vmatpush3.msra.mxu1 %v588_v1 }
 0x14d   :  { %1157 = vmatprep.subr.mxu1 %v587_v2 }
 0x14e   :  { %1158 = vmatpush3.msra.mxu1 %v587_v2 }
 0x14f   :  { %1159 = vmatprep.subr.mxu1 %v586_v3 }
 0x150   :  { %1160 = vmatpush3.msra.mxu1 %v586_v3 }
 0x151   :  { %1161 = vmatprep.subr.mxu1 %v585_v4 }
 0x152   :  { %1162 = vmatpush3.msra.mxu1 %v585_v4 }
 0x153   :  { %1163 = vmatprep.subr.mxu1 %v584_v5 }
 0x154   :  { %1164 = vmatpush3.msra.mxu1 %v584_v5 }
 0x155   :  { %1165 = vmatprep.subr.mxu1 %v583_v6 }
 0x156   :  { %1166 = vmatpush3.msra.mxu1 %v583_v6 }
 0x157   :  { %1167 = vmatprep.subr.mxu1 %v582_v7 }
 0x158   :  { %1168 = vmatpush3.msra.mxu1 %v582_v7 }
 0x159   :  { %1169 = vmatprep.subr.mxu1 %v581_v8 }
 0x15a   :  { %1170 = vmatpush3.msra.mxu1 %v581_v8 }
 0x15b   :  { %1171 = vmatprep.subr.mxu1 %v580_v9 }
 0x15c   :  { %1172 = vmatpush3.msra.mxu1 %v580_v9 }
 0x15d   :  { %1174 = vmatmul.mubr.f32.vlgmr.msra.gmra.mxu1 %v600_v11 }
 0x1fa   :  { %v1140_v13 = vpop.f32.mrf.mxu0 }
 0x1fc   :  { %v570_v17 = vpop.f32.mrf.mxu0 }
 0x1fd   :  { %v1105_v12 = vpop.f32.mrf.mxu1 }
 0x1fe   :  { %v576_v16 = vadd.f32 %v1140_v13, %v1105_v12 }
 0x1ff   :  { %v495_v14 = vpop.f32.mrf.mxu1 }
 0x200   :  { %v571_v21 = vadd.f32 %v570_v17, %v495_v14 }
 0x21d   :  { %v1175_v19 = vpop.f32.mrf.mxu1 }
 0x21e   :  { %v679_v22 = vadd.f32 %v1175_v19, %v576_v16 }
 0x21f   :  { %v669_v24 = vpop.f32.mrf.mxu1 }
 0x220   :  { %v678_v26 = vadd.f32 %v669_v24, %v571_v21  ;;  %v688_v28 = vadd.f32 %v846_v23, %v679_v22 }
 0x222   :  { %v687_v29 = vadd.f32 %v846_v23, %v678_v26  ;;  %v690_v34 = vmax.f32 %v688_v28, 0.0 }
 0x224   :  { %v689_v31 = vmax.f32 %v687_v29, 0.0  ;;  %v692_v37 = vadd.f32 %v690_v34, %v1368_v41 }
 0x226   :  { %v691_v35 = vadd.f32 %v689_v31, %v1365_v40 }
 0x228   :  { %695 = vrot.lane.b32.xlu0 %v691_v35, %s1297_s4 }
 0x22c   :  { %697 = vrot.lane.b32.xlu0 %v692_v37, %s1297_s4 }
 0x29a   :  { %v696_v38 = vpop.permute.xlu0 %695 }
 0x29b   :  { %v701_v39 = vmax.f32 %v691_v35, %v696_v38 }
 0x29d   :  { %v704_v42 = vrot.slane %v701_v39, 1 }
 0x29e   :  { %v698_v40 = vpop.permute.xlu0 %697 }
 0x29f   :  { %v706_v43 = vmax.f32 %v701_v39, %v704_v42  ;;  %v702_v44 = vmax.f32 %v692_v37, %v698_v40 }
 0x2a1   :  { %v712_v45 = vrot.slane %v706_v43, 1  ;;  %v714_v46 = vrot.slane %v706_v43, 2  ;;  %v708_v47 = vrot.slane %v702_v44, 1  ;;  %v716_v50 = vrot.slane %v706_v43, 3 }
 0x2a3   :  { %v728_v48 = vsel %vm727_vm3, %v706_v43, %v712_v45  ;;  %v710_v49 = vmax.f32 %v702_v44, %v708_v47 }
 0x2a4   :  { %v730_v18 = vsel %vm729_vm4, %v728_v48, %v714_v46 }
 0x2a5   :  { %v719_v41 = vrot.slane %v710_v49, 4  ;;  %v721_v51 = vrot.slane %v710_v49, 5  ;;  %v732_v52 = vsel %vm731_vm5, %v730_v18, %v716_v50  ;;  %v723_v53 = vrot.slane %v710_v49, 6 }
 0x2a6   :  { %v725_v55 = vrot.slane %v710_v49, 7 }
 0x2a7   :  { %v734_v54 = vsel %vm733_vm6, %v732_v52, %v719_v41 }
 0x2a8   :  { %v736_v56 = vsel %vm735_vm7, %v734_v54, %v721_v51 }
 0x2a9   :  { %v737_v57 = vsel %vm282_vm1, %v736_v56, %v723_v53 }
 0x2aa   :  { %v738_v58 = vsel %vm107_vm0, %v737_v57, %v725_v55 }
 0x2ab   :  { %1193 = vmatmul.mubr.msk.f32.vlgmr.msra.gmra.mxu0 %vm754_vm8, %v738_v58 }
 0x36b   :  { %v824_v60 = vpop.f32.mrf.mxu0 }
 0x36c   :  { %v825_v61 = vadd.f32 %v847_v59, %v824_v60 }
 0x36d   :  { %v1194_v62 = vpop.f32.mrf.mxu0 }
 0x36e   :  { %828 = vst [vmem:[#allocation9] sm:$0xff] %v825_v61 }
 0x36f   :  { %1275 = shalt.err (!%p1272_p5)
}
 0x370   :  { %838 = dma.vmem_to_hbm [thread:$0]  %s836_s26, 128, %s1428_s7, [#allocation5]  }
 0x371   :  { %1288 = dma.done.wait [#allocation5], 128  }
 0x372   :  { %1289 = vsyncadd [#allocation5], 4294967168 }
 0x373   :  { %842 = vsyncpa [#allocation4], 1 }
 0x374   :  { %843 = vsyncpa [#allocation7], 1 }
 0x375   :  { %844 = vsyncpa [#allocation5], 1 }

</bundles_post_ra>
